<compile_context>
chip_gen: v5e
topology: v5e:2x2
jax: 0.10.0
libtpu: 0.0.40
codegen_flags: <defaults>
</compile_context>

<pallas_src>
import jax
import jax.numpy as jnp
from jax.experimental import pallas as pl
from jax.experimental.pallas import tpu as pltpu


# ---------------------------------------------------------------------------
# Pallas kernel:  out_tile = x_tile @ W_big + bias     (fused patchify+Linear)
# ---------------------------------------------------------------------------
def _band_linear_kernel(x_ref, w_ref, b_ref, o_ref):
    # x_ref: (TM, K)   raw image row-bands (K = ph*W), streamed per grid step
    # w_ref: (K, N)    structured weight, grid-invariant (VMEM resident)
    # b_ref: (1, N)    tiled bias, grid-invariant (VMEM resident)
    # o_ref: (TM, N)   lane-dense output (N = nw*E)
    acc = jnp.dot(x_ref[...], w_ref[...], preferred_element_type=jnp.float32)
    o_ref[...] = (acc + b_ref[...]).astype(o_ref.dtype)


# ---------------------------------------------------------------------------
# One-time weight preprocessing (init-time, reused across forward calls)
# ---------------------------------------------------------------------------
def build_fused_weight(weight, bias, img_size, patch_size):
    """weight: (E, P=ph*pw), bias: (E,) -> (W_big (ph*W, nw*E), b_big (1, nw*E))."""
    E, P = weight.shape
    H, W = img_size
    ph, pw = patch_size
    nw = W // pw
    assert P == ph * pw, "nn.Linear in_features must equal prod(patch_size)"
    w3 = weight.reshape(E, ph, pw)                       # [e, r, c]
    eye = jnp.eye(nw, dtype=weight.dtype)                # [j, k]
    # W_big[(r, j, c), (k, e)] = eye[j, k] * weight[e, r*pw + c]
    w_big = jnp.einsum("jk,erc->rjcke", eye, w3).reshape(ph * W, nw * E)
    b_big = jnp.tile(bias, nw).reshape(1, nw * E)
    return w_big, b_big


def _choose_tile_m(M, K, N, vmem_budget_bytes=12 << 20):
    """Largest M-tile whose double-buffered in/out slabs, plus the resident
    weight+bias, fit a conservative scoped-VMEM budget (safe on v5e/v6e/v7x)."""
    fixed = 2 * 4 * (K * N + N)                 # weight + bias buffers (f32)
    avail = max(vmem_budget_bytes - fixed, 1 << 20)
    if M <= 512 and 2 * 4 * M * (K + N) <= avail:
        return M                                # single full-extent block
    tm = 512
    while tm > 8 and 2 * 4 * tm * (K + N) > avail:
        tm //= 2
    return tm


# ---------------------------------------------------------------------------
# Forward
# ---------------------------------------------------------------------------
def linear_embedding_forward(x, weight, bias, img_size, patch_size,
                             w_big=None, b_big=None):
    """x: (B, 1, H, W) f32 -> (B, nh*nw, E) f32.  Matches LinearEmbedding.forward."""
    B, C, H, W = x.shape
    assert C == 1, "Linear in_features = prod(patch_size) implies single channel"
    ph, pw = patch_size
    nh, nw = H // ph, W // pw
    E = weight.shape[0]

    if w_big is None or b_big is None:
        w_big, b_big = build_fused_weight(weight, bias, (H, W), patch_size)

    M = B * nh          # band rows
    K = ph * W          # contraction width (raw image elements per band row)
    N = nw * E          # lane-dense output width

    x_band = x.reshape(M, K)          # contiguous reshape: no data movement

    TM = _choose_tile_m(M, K, N)
    grid = (pl.cdiv(M, TM),)

    cost = pl.CostEstimate(
        flops=2 * M * K * N,
        transcendentals=0,
        bytes_accessed=4 * (M * K + K * N + N + M * N),
    )

    out_band = pl.pallas_call(
        _band_linear_kernel,
        out_shape=jax.ShapeDtypeStruct((M, N), jnp.float32),
        grid_spec=pl.GridSpec(
            grid=grid,
            in_specs=[
                pl.BlockSpec((TM, K), lambda i: (i, 0)),   # stream image bands
                pl.BlockSpec((K, N), lambda i: (0, 0)),    # weight: VMEM-resident
                pl.BlockSpec((1, N), lambda i: (0, 0)),    # bias:   VMEM-resident
            ],
            out_specs=pl.BlockSpec((TM, N), lambda i: (i, 0)),
        ),
        compiler_params=pltpu.CompilerParams(
            # M-tiles are independent -> shard across v7x's two TensorCores.
            dimension_semantics=("parallel",),
        ),
        cost_estimate=cost,
    )(x_band, w_big, b_big)

    # (B*nh, nw*E) -> (B, nh*nw, E); contiguous reshapes, patch order i*nw + j.
    return out_band.reshape(B, nh, nw, E).reshape(B, nh * nw, E)


# ---------------------------------------------------------------------------
# Reference (plain JAX, mirrors ToPatch + view + Linear) for the sanity check
# ---------------------------------------------------------------------------
def _reference(x, weight, bias, patch_size):
    B, _, H, W = x.shape
    ph, pw = patch_size
    nh, nw = H // ph, W // pw
    xp = x[:, 0].reshape(B, nh, ph, nw, pw)
    xp = jnp.transpose(xp, (0, 1, 3, 2, 4)).reshape(B, nh * nw, ph * pw)
    return xp @ weight.T + bias


# ---------------------------------------------------------------------------
# Main
# ---------------------------------------------------------------------------
if __name__ == "__main__":
    # Small config: 16x16 single-channel image, 4x4 patches -> 16 patches of
    # 16 pixels, embedding size 32, batch 2.
    B = 2
    img_size = (16, 16)
    patch_size = (4, 4)
    embedding_size = 32
    P = patch_size[0] * patch_size[1]

    key = jax.random.PRNGKey(0)
    k_x, k_w, k_b = jax.random.split(key, 3)

    x = jax.random.normal(k_x, (B, 1, *img_size), dtype=jnp.float32)

    # nn.Linear default init: U(-1/sqrt(in_features), 1/sqrt(in_features))
    bound = 1.0 / jnp.sqrt(jnp.float32(P))
    weight = jax.random.uniform(k_w, (embedding_size, P),
                                minval=-bound, maxval=bound, dtype=jnp.float32)
    bias = jax.random.uniform(k_b, (embedding_size,),
                              minval=-bound, maxval=bound, dtype=jnp.float32)

    # Init-time weight preprocessing (done once, reused every forward call).
    w_big, b_big = build_fused_weight(weight, bias, img_size, patch_size)
    w_big = jax.block_until_ready(w_big)

    out = linear_embedding_forward(x, weight, bias, img_size, patch_size,
                                   w_big=w_big, b_big=b_big)
    out = jax.block_until_ready(out)

    ref = _reference(x, weight, bias, patch_size)
    nh, nw = img_size[0] // patch_size[0], img_size[1] // patch_size[1]
    assert out.shape == (B, nh * nw, embedding_size), out.shape
    assert jnp.allclose(out, ref, atol=1e-5, rtol=1e-5), \
        float(jnp.max(jnp.abs(out - ref)))

    print("KERNEL_OK")
</pallas_src>

<mosaic_0001>
module attributes {stable_mosaic.version = 11 : i64} {
  func.func @_band_linear_kernel(%arg0: i32, %arg1: memref<8x64xf32, #tpu.memory_space<vmem>>, %arg2: memref<64x128xf32, #tpu.memory_space<vmem>>, %arg3: memref<1x128xf32, #tpu.memory_space<vmem>>, %arg4: memref<8x128xf32, #tpu.memory_space<vmem>>) attributes {dimension_semantics = [#tpu.dimension_semantics<parallel>], iteration_bounds = array<i64: 1>, scalar_prefetch = 0 : i64, scratch_operands = 0 : i64, tpu.core_type = #tpu.core_type<tc>, window_params = [{transform_indices = @transform_0, window_bounds = array<i64: 8, 64>}, {pipeline_mode = #tpu.pipeline_mode<synchronous>, transform_indices = @transform_1, window_bounds = array<i64: 64, 128>}, {pipeline_mode = #tpu.pipeline_mode<synchronous>, transform_indices = @transform_2, window_bounds = array<i64: 1, 128>}, {transform_indices = @transform_3, window_bounds = array<i64: 8, 128>}]} {
    %c0 = arith.constant 0 : index
    %c0_0 = arith.constant 0 : index
    %0 = vector.load %arg1[%c0, %c0_0] : memref<8x64xf32, #tpu.memory_space<vmem>>, vector<8x64xf32>
    %c0_1 = arith.constant 0 : index
    %c0_2 = arith.constant 0 : index
    %1 = vector.load %arg2[%c0_1, %c0_2] : memref<64x128xf32, #tpu.memory_space<vmem>>, vector<64x128xf32>
    %cst = arith.constant dense<0.000000e+00> : vector<8x128xf32>
    %2 = tpu.matmul %0, %1, %cst {dimension_numbers = #tpu.dot_dimension_numbers<[1], [0], [0], [1], [0, 0, 1, 1], [], []>} : vector<8x64xf32>, vector<64x128xf32>, vector<8x128xf32> -> vector<8x128xf32>
    %c0_3 = arith.constant 0 : index
    %c0_4 = arith.constant 0 : index
    %3 = vector.load %arg3[%c0_3, %c0_4] : memref<1x128xf32, #tpu.memory_space<vmem>>, vector<1x128xf32>
    %4 = vector.broadcast %3 : vector<1x128xf32> to vector<8x128xf32>
    %5 = arith.addf %2, %4 : vector<8x128xf32>
    %c0_5 = arith.constant 0 : index
    %c0_6 = arith.constant 0 : index
    %6 = vector.load %arg4[%c0_5, %c0_6] : memref<8x128xf32, #tpu.memory_space<vmem>>, vector<8x128xf32>
    tpu.vector_store %arg4[%c0_5, %c0_6], %5 {strides = array<i32>} : memref<8x128xf32, #tpu.memory_space<vmem>>, vector<8x128xf32>,
    return
  }
  func.func @transform_0(%arg0: i32) -> (i32, i32) {
    %c0_i32 = arith.constant 0 : i32
    %c0_i32_0 = arith.constant 0 : i32
    return %arg0, %c0_i32 : i32, i32
  }
  func.func @transform_1(%arg0: i32) -> (i32, i32) {
    %c0_i32 = arith.constant 0 : i32
    %c0_i32_0 = arith.constant 0 : i32
    %c0_i32_1 = arith.constant 0 : i32
    return %c0_i32, %c0_i32_0 : i32, i32
  }
  func.func @transform_2(%arg0: i32) -> (i32, i32) {
    %c0_i32 = arith.constant 0 : i32
    %c0_i32_0 = arith.constant 0 : i32
    %c0_i32_1 = arith.constant 0 : i32
    return %c0_i32, %c0_i32_0 : i32, i32
  }
  func.func @transform_3(%arg0: i32) -> (i32, i32) {
    %c0_i32 = arith.constant 0 : i32
    %c0_i32_0 = arith.constant 0 : i32
    return %arg0, %c0_i32 : i32, i32
  }
}

</mosaic_0001>

<bundles_post_ra>
// kernel: tpu_custom_call.1
= control target key start
LH: loop header
LB: loop body
LE: loop exit
PB: predicated region body
PF: predicated region fallthrough
CT: control target
= control target key end

     0   :  { %8 = vsyncpa [#allocation3], 0  ;;  %s223_s0 = inlined_call_operand.hbm [shape: f32[8,64], index: 0, kind: input, shape index: {}]   ;;  %s224_s1 = inlined_call_operand.hbm [shape: f32[64,128], index: 1, kind: input, shape index: {}]   ;;  %s225_s2 = inlined_call_operand.vmem [shape: f32[1,128], index: 2, kind: input, shape index: {}]   ;;  %s226_s3 = inlined_call_operand.hbm [shape: f32[8,128], index: 3, kind: output, shape index: {}]  }
   0x1   :  { %9 = vsyncpa [#allocation6], 0 }
   0x2   :  { %10 = vsyncpa [#allocation4], 0  ;;  %s16_s14 = sshll.u32 %s223_s0, 4  ;;  %s186_s15 = smov [#allocation2]   ;;  %s17_s14 = int_to_ptr.hbm [resolvable:$true] %s16_s14 }
   0x3   :  { %s18_s16 = sshll.u32 %s186_s15, 4  ;;  %s26_s19 = sshll.u32 %s224_s1, 4  ;;  %s19_s16 = int_to_ptr.vmem [resolvable:$true] %s18_s16  ;;  %s27_s19 = int_to_ptr.hbm [resolvable:$true] %s26_s19 }
   0x4   :  { %21 = dma.hbm_to_vmem [thread:$0]  %s17_s14, 128, %s19_s16, [#allocation3]  }
   0x5   :  { %s187_s20 = smov [#allocation5]   ;;  %s188_s22 = smov 128  }
   0x6   :  { %s28_s21 = sshll.u32 %s187_s20, 4  ;;  %s189_s23 = smov 8   ;;  %s29_s21 = int_to_ptr.vmem [resolvable:$true] %s28_s21 }
   0x7   :  { %34 = dma.hbm_to_vmem [thread:$0]  %s27_s19, 1024, %s29_s21, [#allocation6], %s188_s22, %s188_s22, %s189_s23  }
   0x8   :  { %180 = dma.done.wait [#allocation3], 128  }
   0x9   :  { %181 = vsyncadd [#allocation3], 4294967168 }
   0xa   :  { %182 = dma.done.wait [#allocation6], 1024  }
   0xb   :  { %183 = vsyncadd [#allocation6], 4294966272  ;;  %v53_v0 = vld [vmem:[#allocation5 + $0x38] sm:$0xff]  ;;  %v52_v1 = vld [vmem:[#allocation5 + $0x30] sm:$0xff]  ;;  %vm58_vm0 = vcmask 523264   ;;  %s190_s24 = smov [#allocation7]  }
   0xc   :  { %70 = vmatpush.msra.mxu0 %v53_v0  ;;  %v51_v2 = vld [vmem:[#allocation5 + $0x28] sm:$0xff]  ;;  %v50_v3 = vld [vmem:[#allocation5 + $0x20] sm:$0xff]  ;;  %v49_v4 = vld [vmem:[#allocation5 + $0x18] sm:$0xff]  ;;  %s88_s25 = sshll.u32 %s190_s24, 4  ;;  %s90_s28 = sshll.u32 %s226_s3, 4  ;;  %s89_s25 = int_to_ptr.vmem [resolvable:$true] %s88_s25  ;;  %s91_s28 = int_to_ptr.hbm [resolvable:$true] %s90_s28 }
   0xd   :  { %v48_v5 = vld [vmem:[#allocation5 + $0x10] sm:$0xff]  ;;  %v47_v6 = vld [vmem:[#allocation5 + $0x8] sm:$0xff]  ;;  %v46_v7 = vld [vmem:[#allocation5] sm:$0xff] }
   0xe   :  { %71 = vmatpush.msra.mxu0 %v52_v1  ;;  %v45_v8 = vld [vmem:[#allocation2] sm:$0xff] }
   0xf   :  { %v107_v9 = vld [vmem:[%s225_s2] ss:$0 sm:$0xff] }
  0x10   :  { %72 = vmatpush.msra.mxu0 %v51_v2 }
  0x12   :  { %73 = vmatpush.msra.mxu0 %v50_v3 }
  0x14   :  { %74 = vmatpush.msra.mxu0 %v49_v4 }
  0x16   :  { %75 = vmatpush.msra.mxu0 %v48_v5 }
  0x18   :  { %76 = vmatpush.msra.mxu0 %v47_v6 }
  0x1a   :  { %77 = vmatpush.msra.mxu0 %v46_v7 }
  0x1b   :  { %101 = vmatmul.msk.f32.vlgmr.msra.gmra.mxu0 %vm58_vm0, %v45_v8 }
  0x98   :  { %v79_v10 = vpop.f32.mrf.mxu0 }
  0x99   :  { %v80_v11 = vadd.f32 %v107_v9, %v79_v10 }
  0x9b   :  { %82 = vst [vmem:[#allocation7] sm:$0xff] %v80_v11 }
  0x9c   :  { %93 = dma.vmem_to_hbm [thread:$0]  %s89_s25, 128, %s91_s28, [#allocation4]  }
  0x9d   :  { %184 = dma.done.wait [#allocation4], 128  }
  0x9e   :  { %185 = vsyncadd [#allocation4], 4294967168 }
  0x9f   :  { %98 = vsyncpa [#allocation3], 1 }
  0xa0   :  { %99 = vsyncpa [#allocation6], 1 }
  0xa1   :  { %100 = vsyncpa [#allocation4], 1 }

</bundles_post_ra>
